<compile_context>
chip_gen: v5e
topology: v5e:2x2
jax: 0.10.0
libtpu: 0.0.40
codegen_flags: <defaults>
</compile_context>

<pallas_src>
import jax
import jax.numpy as jnp
from jax.experimental import pallas as pl
from jax.experimental.pallas import tpu as pltpu

SUBLANE = 8                      # f32 sublane width
V5E_SAFE_VMEM = 12 * 1024 * 1024 # stay under v5e's 16 MiB scoped-VMEM default


def _round_up(n, m):
    return ((n + m - 1) // m) * m


def _choose_tb(B, A, block_b):
    """Batch tile: multiple of 8, divides B when possible, >=2 grid steps when
    B is large enough (v7x megacore), double-buffered footprint v5e-safe."""
    cap = min(block_b, _round_up(B, SUBLANE))
    if B >= 2 * SUBLANE:
        # ensure at least 2 grid steps so dimension_semantics=("parallel",)
        # can shard the batch across both v7x TensorCores
        cap = min(cap, _round_up(pl.cdiv(B, 2), SUBLANE))
    # keep 2x(in)+2x(out) double-buffered f32 tiles within v5e scoped VMEM
    bytes_per_row = 2 * 2 * A * 4
    cap = min(cap, max(SUBLANE, (V5E_SAFE_VMEM // bytes_per_row) // SUBLANE * SUBLANE))
    cap = max(SUBLANE, (cap // SUBLANE) * SUBLANE)
    # prefer the largest TB <= cap that divides B exactly (no padded tail tile)
    for tb in range(cap, SUBLANE - 1, -SUBLANE):
        if B % tb == 0:
            return tb
    return cap


def ae_forward_kernel(x_ref, w1_ref, b1_ref, w2_ref, b2_ref, o_ref):
    # encoder: Linear(A -> L) + ReLU.  bf16 MXU matmul, f32 accumulate/bias.
    x = x_ref[...].astype(jnp.bfloat16)                       # (TB, A)
    h = jnp.dot(x, w1_ref[...], preferred_element_type=jnp.float32) + b1_ref[...]
    h = jnp.maximum(h, 0.0)
    # decoder: Linear(L -> A) + ReLU
    y = jnp.dot(h.astype(jnp.bfloat16), w2_ref[...],
                preferred_element_type=jnp.float32) + b2_ref[...]
    y = jnp.maximum(y, 0.0)
    o_ref[...] = y.astype(o_ref.dtype)


def ae_forward(x, w1, b1, w2, b2, *, block_b=4096):
    """x: (B, A) f32, w1: (A, L), b1: (1, L), w2: (L, A), b2: (1, A).

    Returns (B, A) f32 == relu(relu(x @ w1 + b1) @ w2 + b2) with bf16 MXU
    operands and f32 accumulation.
    """
    B, A = x.shape
    L = w1.shape[1]
    assert w1.shape == (A, L) and w2.shape == (L, A)
    assert b1.shape == (1, L) and b2.shape == (1, A)

    # bf16 weights for the MXU (cast once, outside the kernel); biases stay f32.
    w1b = w1.astype(jnp.bfloat16)
    w2b = w2.astype(jnp.bfloat16)

    TB = _choose_tb(B, A, block_b)
    B_pad = _round_up(B, TB)
    xp = x if B_pad == B else jnp.pad(x, ((0, B_pad - B), (0, 0)))

    grid = (B_pad // TB,)
    out = pl.pallas_call(
        ae_forward_kernel,
        out_shape=jax.ShapeDtypeStruct((B_pad, A), x.dtype),
        grid=grid,
        in_specs=[
            pl.BlockSpec((TB, A), lambda i: (i, 0)),   # x: tiled over batch
            pl.BlockSpec((A, L), lambda i: (0, 0)),    # W1: VMEM-resident (bf16)
            pl.BlockSpec((1, L), lambda i: (0, 0)),    # b1: VMEM-resident (f32)
            pl.BlockSpec((L, A), lambda i: (0, 0)),    # W2: VMEM-resident (bf16)
            pl.BlockSpec((1, A), lambda i: (0, 0)),    # b2: VMEM-resident (f32)
        ],
        out_specs=pl.BlockSpec((TB, A), lambda i: (i, 0)),
        compiler_params=pltpu.CompilerParams(
            dimension_semantics=("parallel",),         # shard batch across TCs (v7x)
        ),
    )(xp, w1b, b1, w2b, b2)

    return out if B_pad == B else out[:B]


def init_params(key, num_of_atoms, num_of_latent_dimensions):
    """Deterministic init mimicking torch.nn.Linear (uniform +-1/sqrt(fan_in))."""
    k1, k2, k3, k4 = jax.random.split(key, 4)
    a, l = num_of_atoms, num_of_latent_dimensions
    bound1 = 1.0 / jnp.sqrt(a)
    bound2 = 1.0 / jnp.sqrt(l)
    w1 = jax.random.uniform(k1, (a, l), jnp.float32, -bound1, bound1)
    b1 = jax.random.uniform(k2, (1, l), jnp.float32, -bound1, bound1)
    w2 = jax.random.uniform(k3, (l, a), jnp.float32, -bound2, bound2)
    b2 = jax.random.uniform(k4, (1, a), jnp.float32, -bound2, bound2)
    return w1, b1, w2, b2


if __name__ == "__main__":
    # AE(num_of_frames=2, num_of_molecules=4, num_of_atoms=16,
    #    num_of_coords_per_atom=3, num_of_latent_dimensions=8)
    num_of_frames = 2
    num_of_molecules = 4
    num_of_atoms = 16
    num_of_latent_dimensions = 8

    key = jax.random.PRNGKey(0)
    kx, kp = jax.random.split(key)

    B = num_of_frames * num_of_molecules  # flattened batch = 8
    x = jax.random.normal(kx, (B, num_of_atoms), jnp.float32)
    w1, b1, w2, b2 = init_params(kp, num_of_atoms, num_of_latent_dimensions)

    out = ae_forward(x, w1, b1, w2, b2)
    jax.block_until_ready(out)
    assert out.shape == (B, num_of_atoms)

    # bf16-faithful reference (matches the kernel's bf16-operand / f32-accum path)
    def bfc(a):
        return a.astype(jnp.bfloat16).astype(jnp.float32)
    ref_h = jnp.maximum(bfc(x) @ bfc(w1) + b1, 0.0)
    ref_bf = jnp.maximum(bfc(ref_h) @ bfc(w2) + b2, 0.0)
    assert jnp.allclose(out, ref_bf, atol=1e-4, rtol=1e-4)

    # sanity vs the pure-f32 math (loose tolerance: bf16 operand rounding)
    ref_f32 = jnp.maximum(jnp.maximum(x @ w1 + b1, 0.0) @ w2 + b2, 0.0)
    assert jnp.allclose(out, ref_f32, atol=5e-2, rtol=5e-2)

    print("KERNEL_OK")
</pallas_src>

<mosaic_0001>
module attributes {stable_mosaic.version = 11 : i64} {
  func.func @ae_forward_kernel(%arg0: i32, %arg1: memref<8x16xf32, #tpu.memory_space<vmem>>, %arg2: memref<16x8xbf16, #tpu.memory_space<vmem>>, %arg3: memref<1x8xf32, #tpu.memory_space<vmem>>, %arg4: memref<8x16xbf16, #tpu.memory_space<vmem>>, %arg5: memref<1x16xf32, #tpu.memory_space<vmem>>, %arg6: memref<8x16xf32, #tpu.memory_space<vmem>>) attributes {dimension_semantics = [#tpu.dimension_semantics<parallel>], iteration_bounds = array<i64: 1>, scalar_prefetch = 0 : i64, scratch_operands = 0 : i64, tpu.core_type = #tpu.core_type<tc>, window_params = [{transform_indices = @transform_0, window_bounds = array<i64: 8, 16>}, {pipeline_mode = #tpu.pipeline_mode<synchronous>, transform_indices = @transform_1, window_bounds = array<i64: 16, 8>}, {pipeline_mode = #tpu.pipeline_mode<synchronous>, transform_indices = @transform_2, window_bounds = array<i64: 1, 8>}, {pipeline_mode = #tpu.pipeline_mode<synchronous>, transform_indices = @transform_3, window_bounds = array<i64: 8, 16>}, {pipeline_mode = #tpu.pipeline_mode<synchronous>, transform_indices = @transform_4, window_bounds = array<i64: 1, 16>}, {transform_indices = @transform_5, window_bounds = array<i64: 8, 16>}]} {
    %c0 = arith.constant 0 : index
    %c0_0 = arith.constant 0 : index
    %0 = vector.load %arg1[%c0, %c0_0] : memref<8x16xf32, #tpu.memory_space<vmem>>, vector<8x16xf32>
    %1 = arith.truncf %0 : vector<8x16xf32> to vector<8x16xbf16>
    %c0_1 = arith.constant 0 : index
    %c0_2 = arith.constant 0 : index
    %2 = vector.load %arg2[%c0_1, %c0_2] : memref<16x8xbf16, #tpu.memory_space<vmem>>, vector<16x8xbf16>
    %cst = arith.constant dense<0.000000e+00> : vector<8x8xf32>
    %3 = tpu.matmul %1, %2, %cst {dimension_numbers = #tpu.dot_dimension_numbers<[1], [0], [0], [1], [0, 0, 1, 1], [], []>} : vector<8x16xbf16>, vector<16x8xbf16>, vector<8x8xf32> -> vector<8x8xf32>
    %c0_3 = arith.constant 0 : index
    %c0_4 = arith.constant 0 : index
    %4 = vector.load %arg3[%c0_3, %c0_4] : memref<1x8xf32, #tpu.memory_space<vmem>>, vector<1x8xf32>
    %5 = vector.broadcast %4 : vector<1x8xf32> to vector<8x8xf32>
    %6 = arith.addf %3, %5 : vector<8x8xf32>
    %cst_5 = arith.constant 0.000000e+00 : f32
    %7 = vector.broadcast %cst_5 : f32 to vector<8x8xf32>
    %8 = arith.maximumf %6, %7 : vector<8x8xf32>
    %9 = arith.truncf %8 : vector<8x8xf32> to vector<8x8xbf16>
    %c0_6 = arith.constant 0 : index
    %c0_7 = arith.constant 0 : index
    %10 = vector.load %arg4[%c0_6, %c0_7] : memref<8x16xbf16, #tpu.memory_space<vmem>>, vector<8x16xbf16>
    %cst_8 = arith.constant dense<0.000000e+00> : vector<8x16xf32>
    %11 = tpu.matmul %9, %10, %cst_8 {dimension_numbers = #tpu.dot_dimension_numbers<[1], [0], [0], [1], [0, 0, 1, 1], [], []>} : vector<8x8xbf16>, vector<8x16xbf16>, vector<8x16xf32> -> vector<8x16xf32>
    %c0_9 = arith.constant 0 : index
    %c0_10 = arith.constant 0 : index
    %12 = vector.load %arg5[%c0_9, %c0_10] : memref<1x16xf32, #tpu.memory_space<vmem>>, vector<1x16xf32>
    %13 = vector.broadcast %12 : vector<1x16xf32> to vector<8x16xf32>
    %14 = arith.addf %11, %13 : vector<8x16xf32>
    %cst_11 = arith.constant 0.000000e+00 : f32
    %15 = vector.broadcast %cst_11 : f32 to vector<8x16xf32>
    %16 = arith.maximumf %14, %15 : vector<8x16xf32>
    %c0_12 = arith.constant 0 : index
    %c0_13 = arith.constant 0 : index
    %17 = vector.load %arg6[%c0_12, %c0_13] : memref<8x16xf32, #tpu.memory_space<vmem>>, vector<8x16xf32>
    tpu.vector_store %arg6[%c0_12, %c0_13], %16 {strides = array<i32>} : memref<8x16xf32, #tpu.memory_space<vmem>>, vector<8x16xf32>,
    return
  }
  func.func @transform_0(%arg0: i32) -> (i32, i32) {
    %c0_i32 = arith.constant 0 : i32
    %c0_i32_0 = arith.constant 0 : i32
    return %arg0, %c0_i32 : i32, i32
  }
  func.func @transform_1(%arg0: i32) -> (i32, i32) {
    %c0_i32 = arith.constant 0 : i32
    %c0_i32_0 = arith.constant 0 : i32
    %c0_i32_1 = arith.constant 0 : i32
    return %c0_i32, %c0_i32_0 : i32, i32
  }
  func.func @transform_2(%arg0: i32) -> (i32, i32) {
    %c0_i32 = arith.constant 0 : i32
    %c0_i32_0 = arith.constant 0 : i32
    %c0_i32_1 = arith.constant 0 : i32
    return %c0_i32, %c0_i32_0 : i32, i32
  }
  func.func @transform_3(%arg0: i32) -> (i32, i32) {
    %c0_i32 = arith.constant 0 : i32
    %c0_i32_0 = arith.constant 0 : i32
    %c0_i32_1 = arith.constant 0 : i32
    return %c0_i32, %c0_i32_0 : i32, i32
  }
  func.func @transform_4(%arg0: i32) -> (i32, i32) {
    %c0_i32 = arith.constant 0 : i32
    %c0_i32_0 = arith.constant 0 : i32
    %c0_i32_1 = arith.constant 0 : i32
    return %c0_i32, %c0_i32_0 : i32, i32
  }
  func.func @transform_5(%arg0: i32) -> (i32, i32) {
    %c0_i32 = arith.constant 0 : i32
    %c0_i32_0 = arith.constant 0 : i32
    return %arg0, %c0_i32 : i32, i32
  }
}

</mosaic_0001>

<bundles_post_ra>
// kernel: tpu_custom_call.1
= control target key start
LH: loop header
LB: loop body
LE: loop exit
PB: predicated region body
PF: predicated region fallthrough
CT: control target
= control target key end

     0   :  { %s186_s0 = inlined_call_operand.vmem [shape: f32[8,16], index: 0, kind: input, shape index: {}]   ;;  %s187_s1 = inlined_call_operand.vmem [shape: bf16[16,8], index: 1, kind: input, shape index: {}]   ;;  %s188_s2 = inlined_call_operand.vmem [shape: f32[1,8], index: 2, kind: input, shape index: {}]   ;;  %s189_s3 = inlined_call_operand.vmem [shape: bf16[8,16], index: 3, kind: input, shape index: {}]   ;;  %s190_s4 = inlined_call_operand.vmem [shape: f32[1,16], index: 4, kind: input, shape index: {}]   ;;  %s191_s5 = inlined_call_operand.hbm [shape: f32[8,16], index: 5, kind: output, shape index: {}]  }
   0x1   :  { %v105_v0 = vld [vmem:[%s187_s1] sm:$0xff] }
   0x2   :  { %v22_v1 = vld [vmem:[%s186_s0] sm:$0xff] }
   0x3   :  { %v23_v2 = vpack.c.bf16 %v22_v1, %v22_v1 }
   0x4   :  { %10 = vsyncpa [#allocation3], 0  ;;  %47 = vmatpush.bf16.msra.mxu0 %v105_v0  ;;  %vm36_vm0 = vcmask 130048   ;;  %v55_v3 = vld [vmem:[%s189_s3] sm:$0xf]  ;;  %vm64_vm1 = vcmask 1043456  }
   0x5   :  { %v66_v4 = vsel %vm64_vm1, %v55_v3, 0  ;;  %v107_v5 = vld [vmem:[%s188_s2] ss:$0 sm:$0xff]  ;;  %vm60_vm2 = vcmask 64512   ;;  %s135_s3 = smov [#allocation2]   ;;  %s90_s29 = sshll.u32 %s191_s5, 4  ;;  %s91_s29 = int_to_ptr.hbm [resolvable:$true] %s90_s29 }
   0x6   :  { %75 = vmatpush.bf16.msra.mxu1 %v66_v4  ;;  %v108_v11 = vld [vmem:[%s190_s4] ss:$0 sm:$0xff]  ;;  %s88_s26 = sshll.u32 %s135_s3, 4  ;;  %s89_s26 = int_to_ptr.vmem [resolvable:$true] %s88_s26 }
   0x7   :  { %103 = vmatmul.msk.bf16.vlgmr.msra.gmra.mxu0 %vm36_vm0, %v23_v2 }
  0x84   :  { %v49_v6 = vpop.f32.mrf.mxu0 }
  0x85   :  { %v50_v7 = vadd.f32 %v107_v5, %v49_v6 }
  0x87   :  { %v53_v8 = vmax.f32 %v50_v7, 0.0 }
  0x89   :  { %v54_v9 = vpack.c.bf16 %v53_v8, %v53_v8 }
  0x8b   :  { %104 = vmatmul.msk.bf16.vlgmr.msra.gmra.mxu1 %vm60_vm2, %v54_v9 }
  0x8c   :  { %v51_v10 = vpop.f32.mrf.mxu0 }
 0x108   :  { %v77_v12 = vpop.f32.mrf.mxu1 }
 0x109   :  { %v78_v13 = vadd.f32 %v108_v11, %v77_v12 }
 0x10b   :  { %v81_v14 = vmax.f32 %v78_v13, 0.0 }
 0x10d   :  { %82 = vst.msk [vmem:[#allocation2] sm:$0xff] %vm36_vm0, %v81_v14 }
 0x10e   :  { %93 = dma.vmem_to_hbm [thread:$0]  %s89_s26, 128, %s91_s29, [#allocation3]  }
 0x110   :  { %v79_v15 = vpop.f32.mrf.mxu1 }
 0x111   :  { %133 = dma.done.wait [#allocation3], 128  }
 0x112   :  { %134 = vsyncadd [#allocation3], 4294967168 }
 0x113   :  { %98 = vsyncpa [#allocation3], 1 }

</bundles_post_ra>
